<compile_context>
chip_gen: v7x
topology: tpu7x:2x2x1
jax: 0.10.0
libtpu: 0.0.40
codegen_flags: <defaults>
</compile_context>

<pallas_src>
import jax
import jax.numpy as jnp
from jax.experimental import pallas as pl
from jax.experimental.pallas import tpu as pltpu


_SQRT_HALF = 0.7071067811865476  # 1 / sqrt(2)

# Abramowitz & Stegun 7.1.26 erf coefficients (|err| <= 1.5e-7).
_P = 0.3275911
_A1 = 0.254829592
_A2 = -0.284496736
_A3 = 1.421413741
_A4 = -1.453152027
_A5 = 1.061405429

_LANE = 128
_TARGET_BLOCK_BYTES = 6 * 1024 * 1024  # ~6 MiB blocks (per perf review)


def _gelu_kernel(x_ref, o_ref):
    xf = x_ref[...].astype(jnp.float32)

    z = xf * _SQRT_HALF           # x / sqrt(2)
    az = jnp.abs(z)
    z2 = z * z

    # t = 1 / (1 + p*|z|): push the divide to the EUP slot. approx=False keeps
    # full precision (approx vrcp error compounds through the t^5 polynomial).
    t = pl.reciprocal(1.0 + _P * az, approx=False)
    poly = ((((_A5 * t + _A4) * t + _A3) * t + _A2) * t + _A1) * t
    erf_abs = 1.0 - poly * jnp.exp(-z2)

    # GELU(x) = 0.5*x*(1 + erf(z)) = (z + |z| * erf(|z|)) / sqrt(2)
    # (erf is odd and sign(x) == sign(z)) — no jnp.where / sign select needed.
    o_ref[...] = (_SQRT_HALF * (z + az * erf_abs)).astype(o_ref.dtype)


def _sublane_multiple(dtype) -> int:
    # 8 sublanes for 32-bit, 16 rows/packed-vreg for 16-bit, 32 for 8-bit.
    itemsize = jnp.dtype(dtype).itemsize
    return 8 * max(1, 4 // itemsize)


def _pick_width(n: int) -> int:
    # Widest lane-dense width that divides n exactly (no pad, no slice).
    for w in (8192, 4096, 2048, 1024, 512, 256, 128):
        if n % w == 0:
            return w
    raise ValueError("width search requires n % 128 == 0")


def _gelu_2d(x2d: jax.Array, tile_rows: int) -> jax.Array:
    rows, width = x2d.shape
    itemsize = jnp.dtype(x2d.dtype).itemsize
    n = rows * width
    block_bytes = tile_rows * width * itemsize
    # 2 double-buffered input blocks + 2 output blocks + generous headroom.
    vmem_limit = int(4 * block_bytes) + (8 << 20)
    grid = (pl.cdiv(rows, tile_rows),)
    return pl.pallas_call(
        _gelu_kernel,
        out_shape=jax.ShapeDtypeStruct((rows, width), x2d.dtype),
        grid=grid,
        in_specs=[pl.BlockSpec((tile_rows, width), lambda i: (i, 0))],
        out_specs=pl.BlockSpec((tile_rows, width), lambda i: (i, 0)),
        compiler_params=pltpu.CompilerParams(
            dimension_semantics=("parallel",),
            vmem_limit_bytes=vmem_limit),
        cost_estimate=pl.CostEstimate(
            flops=20 * n,
            transcendentals=2 * n,
            bytes_accessed=2 * n * itemsize),
    )(x2d)


def _gelu_flat(flat: jax.Array, width: int) -> jax.Array:
    """GELU on a 1-D array whose length is an exact multiple of `width`."""
    n = flat.shape[0]
    rows = n // width
    itemsize = jnp.dtype(flat.dtype).itemsize
    sub = _sublane_multiple(flat.dtype)

    target_rows = max(sub, (_TARGET_BLOCK_BYTES // (width * itemsize)) // sub * sub)
    if rows <= target_rows:
        # Small input: one full-array block, zero tiling overhead.
        tile_rows = rows
    else:
        # Keep at least ~4 blocks so the "parallel" grid feeds both v7x TCs.
        quarter = -(-rows // 4)
        quarter = max(sub, -(-quarter // sub) * sub)
        tile_rows = min(target_rows, quarter)

    return _gelu_2d(flat.reshape(rows, width), tile_rows).reshape(-1)


def gelu(x: jax.Array) -> jax.Array:
    """Applies exact (erf-based) GELU elementwise via a Pallas TPU kernel."""
    orig_shape = x.shape
    n = x.size
    if n == 0:
        return x

    flat = x.reshape(-1)

    if n % _LANE == 0:
        # Common case: no pad, no slice — contiguous reshape is free.
        return _gelu_flat(flat, _pick_width(n)).reshape(orig_shape)

    # Ragged size: avoid the pad + full trailing-slice round trips.
    prefix = (n // _LANE) * _LANE
    if prefix == 0:
        # Tiny (< 128 elements): minimal pad to one lane width, single block.
        padded = jnp.pad(flat, (0, _LANE - n))
        return _gelu_flat(padded, _LANE)[:n].reshape(orig_shape)

    # 128-aligned prefix through the kernel; the < 128-element tail via XLA.
    head = _gelu_flat(flat[:prefix], _pick_width(prefix))
    tail = jax.nn.gelu(flat[prefix:], approximate=False)
    return jnp.concatenate([head, tail]).reshape(orig_shape)


class GELU:
    """Mirror of the PyTorch module; forward uses the Pallas kernel."""

    def __call__(self, x: jax.Array) -> jax.Array:
        return gelu(x)

    def extra_repr(self):
        return "backend=Pallas-TPU"


if __name__ == "__main__":
    key = jax.random.PRNGKey(0)
    module = GELU()

    # NCHW-style input, same convention as the PyTorch module would receive.
    x = jax.random.normal(key, (2, 4, 16, 16), dtype=jnp.float32)
    y = jax.block_until_ready(module(x))
    ref = jax.nn.gelu(x, approximate=False)
    assert y.shape == x.shape and y.dtype == x.dtype
    assert jnp.allclose(y, ref, atol=1e-5, rtol=1e-5)

    # Ragged shape to exercise the non-128-multiple path.
    x2 = jax.random.normal(jax.random.PRNGKey(1), (3, 5, 7), dtype=jnp.float32)
    y2 = jax.block_until_ready(module(x2))
    ref2 = jax.nn.gelu(x2, approximate=False)
    assert y2.shape == x2.shape and y2.dtype == x2.dtype
    assert jnp.allclose(y2, ref2, atol=1e-5, rtol=1e-5)

    print("KERNEL_OK")
</pallas_src>

<mosaic_0001>
module attributes {stable_mosaic.version = 11 : i64} {
  func.func @_gelu_kernel(%arg0: i32, %arg1: memref<1x2048xf32, #tpu.memory_space<vmem>>, %arg2: memref<1x2048xf32, #tpu.memory_space<vmem>>) attributes {dimension_semantics = [#tpu.dimension_semantics<parallel>], iteration_bounds = array<i64: 1>, scalar_prefetch = 0 : i64, scratch_operands = 0 : i64, tpu.core_type = #tpu.core_type<tc>, window_params = [{transform_indices = @transform_0, window_bounds = array<i64: 1, 2048>}, {transform_indices = @transform_1, window_bounds = array<i64: 1, 2048>}]} {
    %c0 = arith.constant 0 : index
    %c0_0 = arith.constant 0 : index
    %0 = vector.load %arg1[%c0, %c0_0] : memref<1x2048xf32, #tpu.memory_space<vmem>>, vector<1x2048xf32>
    %cst = arith.constant 0.707106769 : f32
    %1 = vector.broadcast %cst : f32 to vector<1x2048xf32>
    %2 = arith.mulf %0, %1 : vector<1x2048xf32>
    %3 = math.absf %2 : vector<1x2048xf32>
    %4 = arith.mulf %2, %2 : vector<1x2048xf32>
    %cst_1 = arith.constant 0.327591091 : f32
    %5 = vector.broadcast %cst_1 : f32 to vector<1x2048xf32>
    %6 = arith.mulf %5, %3 : vector<1x2048xf32>
    %cst_2 = arith.constant 1.000000e+00 : f32
    %7 = vector.broadcast %cst_2 : f32 to vector<1x2048xf32>
    %8 = arith.addf %7, %6 : vector<1x2048xf32>
    %9 = tpu.reciprocal %8 : vector<1x2048xf32> -> vector<1x2048xf32>
    %cst_3 = arith.constant 1.06140542 : f32
    %10 = vector.broadcast %cst_3 : f32 to vector<1x2048xf32>
    %11 = arith.mulf %10, %9 : vector<1x2048xf32>
    %cst_4 = arith.constant -1.45315206 : f32
    %12 = vector.broadcast %cst_4 : f32 to vector<1x2048xf32>
    %13 = arith.addf %11, %12 : vector<1x2048xf32>
    %14 = arith.mulf %13, %9 : vector<1x2048xf32>
    %cst_5 = arith.constant 1.42141378 : f32
    %15 = vector.broadcast %cst_5 : f32 to vector<1x2048xf32>
    %16 = arith.addf %14, %15 : vector<1x2048xf32>
    %17 = arith.mulf %16, %9 : vector<1x2048xf32>
    %cst_6 = arith.constant -0.284496725 : f32
    %18 = vector.broadcast %cst_6 : f32 to vector<1x2048xf32>
    %19 = arith.addf %17, %18 : vector<1x2048xf32>
    %20 = arith.mulf %19, %9 : vector<1x2048xf32>
    %cst_7 = arith.constant 0.254829586 : f32
    %21 = vector.broadcast %cst_7 : f32 to vector<1x2048xf32>
    %22 = arith.addf %20, %21 : vector<1x2048xf32>
    %23 = arith.mulf %22, %9 : vector<1x2048xf32>
    %cst_8 = arith.constant 0.000000e+00 : f32
    %24 = vector.broadcast %cst_8 : f32 to vector<1x2048xf32>
    %25 = arith.subf %24, %4 : vector<1x2048xf32>
    %26 = math.exp %25 : vector<1x2048xf32>
    %27 = arith.mulf %23, %26 : vector<1x2048xf32>
    %cst_9 = arith.constant 1.000000e+00 : f32
    %28 = vector.broadcast %cst_9 : f32 to vector<1x2048xf32>
    %29 = arith.subf %28, %27 : vector<1x2048xf32>
    %30 = arith.mulf %3, %29 : vector<1x2048xf32>
    %31 = arith.addf %2, %30 : vector<1x2048xf32>
    %cst_10 = arith.constant 0.707106769 : f32
    %32 = vector.broadcast %cst_10 : f32 to vector<1x2048xf32>
    %33 = arith.mulf %32, %31 : vector<1x2048xf32>
    %c0_11 = arith.constant 0 : index
    %c0_12 = arith.constant 0 : index
    %34 = vector.load %arg2[%c0_11, %c0_12] : memref<1x2048xf32, #tpu.memory_space<vmem>>, vector<1x2048xf32>
    tpu.vector_store %arg2[%c0_11, %c0_12], %33 {strides = array<i32>} : memref<1x2048xf32, #tpu.memory_space<vmem>>, vector<1x2048xf32>,
    return
  }
  func.func @transform_0(%arg0: i32) -> (i32, i32) {
    %c0_i32 = arith.constant 0 : i32
    %c0_i32_0 = arith.constant 0 : i32
    return %arg0, %c0_i32 : i32, i32
  }
  func.func @transform_1(%arg0: i32) -> (i32, i32) {
    %c0_i32 = arith.constant 0 : i32
    %c0_i32_0 = arith.constant 0 : i32
    return %arg0, %c0_i32 : i32, i32
  }
}

</mosaic_0001>

<bundles_post_ra>
// kernel: tpu_custom_call.1
= control target key start
LH: loop header
LB: loop body
LE: loop exit
PB: predicated region body
PF: predicated region fallthrough
CT: control target
= control target key end

     0   :  { %6 = vsyncpa [#allocation3], 0  ;;  %s180_s0 = inlined_call_operand.hbm [shape: f32[1,2048], index: 0, kind: input, shape index: {}]   ;;  %s181_s1 = inlined_call_operand.hbm [shape: f32[1,2048], index: 1, kind: output, shape index: {}]  }
   0x1   :  { %7 = vsyncpa [#allocation4], 0  ;;  %s144_s6 = smov [#allocation2]   ;;  %s96_s10 = scalar_lea.hbm %s180_s0, 256 }
   0x2   :  { %s14_s7 = sshll.u32 %s144_s6, 4  ;;  %p97_p0 = scmp.ne.s32.totalorder %s180_s0, %s96_s10  ;;  %s15_s7 = int_to_ptr.vmem [resolvable:$true] %s14_s7 }
   0x3   :  { %p100_p1 = scmp.lt.u32.totalorder %s96_s10, %s180_s0 }
   0x5   :  { %p102_p2 = pnand %p100_p1, %p97_p0 }
   0x7   :  { %105 = shalt.err (!%p102_p2)
}
   0x8   :  { %s106_s15 = scalar_lea.vmem %s15_s7, 256  ;;  %p111_p4 = scmp.lt.s32.totalorder %s15_s7, %s15_s7 }
   0x9   :  { %p107_p3 = scmp.ne.s32.totalorder %s15_s7, %s106_s15  ;;  %p112_p5 = scmp.lt.s32.totalorder %s106_s15, %s106_s15 }
   0xb   :  { %p113_p6 = por %p112_p5, %p111_p4 }
   0xd   :  { %p114_p7 = pnand %p113_p6, %p107_p3 }
   0xf   :  { %117 = shalt.err (!%p114_p7)
}
  0x10   :  { %17 = dma.hbm_to_vmem [thread:$0]  %s180_s0, 256, %s15_s7, [#allocation3]  }
  0x11   :  { %140 = dma.done.wait [#allocation3], 256  }
  0x12   :  { %141 = vsyncadd [#allocation3], 4294967040  ;;  %v21_v0 = vld [vmem:[#allocation2] sm:$0xff]  ;;  %v22_v1 = vld [vmem:[#allocation2 + $0x8] sm:$0xff]  ;;  %s145_s0 = smov [#allocation5]  }
  0x13   :  { %v23_v2 = vmul.f32 0.70710677, %v21_v0  ;;  %v24_v3 = vmul.f32 0.70710677, %v22_v1  ;;  %s77_s18 = sshll.u32 %s145_s0, 4  ;;  %s78_s18 = int_to_ptr.vmem [resolvable:$true] %s77_s18 }
  0x14   :  { %s118_s19 = scalar_lea.vmem %s78_s18, 256  ;;  %p123_p9 = scmp.lt.s32.totalorder %s78_s18, %s78_s18 }
  0x15   :  { %v25_v4 = vand.u32 2147483647, %v23_v2  ;;  %v26_v5 = vand.u32 2147483647, %v24_v3  ;;  %v27_v10 = vmul.f32 %v23_v2, %v23_v2  ;;  %v28_v11 = vmul.f32 %v24_v3, %v24_v3  ;;  %p119_p8 = scmp.ne.s32.totalorder %s78_s18, %s118_s19  ;;  %p124_p10 = scmp.lt.s32.totalorder %s118_s19, %s118_s19 }
  0x17   :  { %v29_v6 = vmul.f32 0.3275911, %v25_v4  ;;  %v30_v7 = vmul.f32 0.3275911, %v26_v5  ;;  %v53_v12 = vsub.f32 0.0, %v27_v10  ;;  %v54_v14 = vsub.f32 0.0, %v28_v11  ;;  %p125_p11 = por %p124_p10, %p123_p9 }
  0x19   :  { %v31_v8 = vadd.f32 1.0, %v29_v6  ;;  %v32_v9 = vadd.f32 1.0, %v30_v7  ;;  %v55_v17 = vmul.f32 1.442695, %v53_v12  ;;  %v57_v20 = vmul.f32 1.442695, %v54_v14  ;;  %p126_p12 = pnand %p125_p11, %p119_p8 }
  0x1b   :  { %88 = vrcp.f32 %v31_v8 }
  0x1c   :  { %90 = vrcp.f32 %v32_v9 }
  0x1d   :  { %92 = vpow2.f32 %v55_v17 }
  0x1e   :  { %94 = vpow2.f32 %v57_v20 }
  0x25   :  { %v89_v13 = vpop.eup %88 }
  0x26   :  { %v35_v15 = vmul.f32 1.0614054, %v89_v13  ;;  %v91_v16 = vpop.eup %90 }
  0x27   :  { %v36_v19 = vmul.f32 1.0614054, %v91_v16  ;;  %v93_v33 = vpop.eup %92 }
  0x28   :  { %v37_v18 = vadd.f32 -1.4531521, %v35_v15  ;;  %v95_v36 = vpop.eup %94 }
  0x29   :  { %v38_v22 = vadd.f32 -1.4531521, %v36_v19 }
  0x2a   :  { %v39_v21 = vmul.f32 %v89_v13, %v37_v18 }
  0x2b   :  { %v40_v24 = vmul.f32 %v91_v16, %v38_v22 }
  0x2c   :  { %v41_v23 = vadd.f32 1.4214138, %v39_v21 }
  0x2d   :  { %v42_v26 = vadd.f32 1.4214138, %v40_v24 }
  0x2e   :  { %v43_v25 = vmul.f32 %v89_v13, %v41_v23 }
  0x2f   :  { %v44_v28 = vmul.f32 %v91_v16, %v42_v26 }
  0x30   :  { %v45_v27 = vadd.f32 -0.28449672, %v43_v25 }
  0x31   :  { %v46_v30 = vadd.f32 -0.28449672, %v44_v28 }
  0x32   :  { %v47_v29 = vmul.f32 %v89_v13, %v45_v27 }
  0x33   :  { %v48_v32 = vmul.f32 %v91_v16, %v46_v30 }
  0x34   :  { %v49_v31 = vadd.f32 0.2548296, %v47_v29 }
  0x35   :  { %v50_v35 = vadd.f32 0.2548296, %v48_v32 }
  0x36   :  { %v51_v34 = vmul.f32 %v89_v13, %v49_v31 }
  0x37   :  { %v52_v38 = vmul.f32 %v91_v16, %v50_v35 }
  0x38   :  { %v59_v37 = vmul.f32 %v93_v33, %v51_v34 }
  0x39   :  { %v60_v40 = vmul.f32 %v95_v36, %v52_v38 }
  0x3a   :  { %v61_v39 = vsub.f32 1.0, %v59_v37 }
  0x3b   :  { %v62_v42 = vsub.f32 1.0, %v60_v40 }
  0x3c   :  { %v63_v41 = vmul.f32 %v61_v39, %v25_v4 }
  0x3d   :  { %v64_v44 = vmul.f32 %v62_v42, %v26_v5 }
  0x3e   :  { %v65_v43 = vadd.f32 %v63_v41, %v23_v2 }
  0x3f   :  { %v66_v46 = vadd.f32 %v64_v44, %v24_v3 }
  0x40   :  { %v67_v45 = vmul.f32 0.70710677, %v65_v43 }
  0x41   :  { %v68_v47 = vmul.f32 0.70710677, %v66_v46 }
  0x42   :  { %69 = vst [vmem:[#allocation5] sm:$0xff] %v67_v45 }
  0x43   :  { %70 = vst [vmem:[#allocation5 + $0x8] sm:$0xff] %v68_v47 }
  0x44   :  { %129 = shalt.err (!%p126_p12)
}
  0x45   :  { %s130_s22 = scalar_lea.hbm %s181_s1, 256 }
  0x46   :  { %p131_p13 = scmp.ne.s32.totalorder %s181_s1, %s130_s22  ;;  %p134_p0 = scmp.lt.u32.totalorder %s130_s22, %s181_s1 }
  0x48   :  { %p136_p1 = pnand %p134_p0, %p131_p13 }
  0x4a   :  { %139 = shalt.err (!%p136_p1)
}
  0x4b   :  { %80 = dma.vmem_to_hbm [thread:$0]  %s78_s18, 256, %s181_s1, [#allocation4]  }
  0x4c   :  { %142 = dma.done.wait [#allocation4], 256  }
  0x4d   :  { %143 = vsyncadd [#allocation4], 4294967040 }
  0x4e   :  { %84 = vsyncpa [#allocation3], 1 }
  0x4f   :  { %85 = vsyncpa [#allocation4], 1 }

</bundles_post_ra>
